<compile_context>
chip_gen: v7x
topology: tpu7x:2x2x1
jax: 0.10.0
libtpu: 0.0.40
codegen_flags: <defaults>
</compile_context>

<pallas_src>
import jax
import jax.numpy as jnp
from jax.experimental import pallas as pl
from jax.experimental.pallas import tpu as pltpu


FEATURES = 1024
HIDDEN1 = 512
HIDDEN2 = 20
CLASSES = 4


def mlp_kernel(x_ref, w1_ref, b1_ref, w2_ref, b2_ref, w3_ref, b3_ref, o_ref):
    # fc1 + ReLU  (dominant MXU work: (TB,1024) @ (1024,512), bf16 in, f32 acc)
    h1 = jnp.dot(x_ref[...], w1_ref[...], preferred_element_type=jnp.float32)
    h1 = jnp.maximum(h1 + b1_ref[...], 0.0)
    # fc2 + ReLU  (epilogue-sized: N=20, f32)
    h2 = jnp.dot(h1, w2_ref[...], preferred_element_type=jnp.float32)
    h2 = jnp.maximum(h2 + b2_ref[...], 0.0)
    # fc3 (logits, no activation; N=4)
    o_ref[...] = (
        jnp.dot(h2, w3_ref[...], preferred_element_type=jnp.float32) + b3_ref[...]
    )


def _round_up(n, m):
    return ((n + m - 1) // m) * m


def _pick_tile(B, tb):
    """Batch tile: multiple of 16 (bf16 sublane packing), >= 2 grid steps
    when the batch is big enough so both v7x TensorCores stay busy."""
    if B <= 16:
        return B  # single full-batch block (full array dim is always legal)
    TB = min(tb, _round_up(B, 16))
    if pl.cdiv(B, TB) < 2:
        TB = max(16, _round_up(pl.cdiv(B, 2), 16))
    return TB


def mlp_forward(x, w1, b1, w2, b2, w3, b3, *, tb=1024):
    B = x.shape[0]
    TB = _pick_tile(B, tb)
    n_tiles = pl.cdiv(B, TB)

    # bf16 inputs for the dominant fc1 matmul; f32 accumulation in-kernel.
    # (In production, precast w1 once instead of per call.)
    x_bf16 = x.astype(jnp.bfloat16)
    w1_bf16 = w1.astype(jnp.bfloat16)

    # x / output tiles march over the batch; weights & biases use a constant
    # index_map so Pallas keeps them resident in VMEM across grid steps.
    x_spec = pl.BlockSpec((TB, FEATURES), lambda i: (i, 0))
    o_spec = pl.BlockSpec((TB, CLASSES), lambda i: (i, 0))
    const = lambda shape: pl.BlockSpec(shape, lambda i: (0, 0))

    flops = 2 * B * (FEATURES * HIDDEN1 + HIDDEN1 * HIDDEN2 + HIDDEN2 * CLASSES)
    bytes_accessed = (
        2 * B * FEATURES                     # x (bf16)
        + 2 * FEATURES * HIDDEN1             # w1 (bf16)
        + 4 * (HIDDEN1                       # b1
               + HIDDEN1 * HIDDEN2 + HIDDEN2 # w2, b2
               + HIDDEN2 * CLASSES + CLASSES # w3, b3
               + B * CLASSES)                # out
    )

    out = pl.pallas_call(
        mlp_kernel,
        out_shape=jax.ShapeDtypeStruct((B, CLASSES), jnp.float32),
        grid=(n_tiles,),
        in_specs=[
            x_spec,
            const((FEATURES, HIDDEN1)),
            const((1, HIDDEN1)),
            const((HIDDEN1, HIDDEN2)),
            const((1, HIDDEN2)),
            const((HIDDEN2, CLASSES)),
            const((1, CLASSES)),
        ],
        out_specs=o_spec,
        compiler_params=pltpu.CompilerParams(
            dimension_semantics=("parallel",),
            vmem_limit_bytes=32 << 20,
        ),
        cost_estimate=pl.CostEstimate(
            flops=flops, transcendentals=0, bytes_accessed=bytes_accessed
        ),
    )(x_bf16, w1_bf16, b1, w2, b2, w3, b3)

    return out


def init_linear(key, fan_in, fan_out):
    # Mimic PyTorch nn.Linear default init: U(-1/sqrt(fan_in), 1/sqrt(fan_in)).
    kw, kb = jax.random.split(key)
    bound = 1.0 / jnp.sqrt(jnp.float32(fan_in))
    w = jax.random.uniform(kw, (fan_in, fan_out), jnp.float32, -bound, bound)
    b = jax.random.uniform(kb, (1, fan_out), jnp.float32, -bound, bound)
    return w, b


def reference_forward_bf16(x, w1, b1, w2, b2, w3, b3):
    # Mirrors the kernel's numerics: bf16 fc1 inputs, f32 accumulation.
    h1 = jnp.dot(
        x.astype(jnp.bfloat16),
        w1.astype(jnp.bfloat16),
        preferred_element_type=jnp.float32,
    )
    h1 = jnp.maximum(h1 + b1, 0.0)
    h2 = jnp.maximum(h1 @ w2 + b2, 0.0)
    return h2 @ w3 + b3


if __name__ == "__main__":
    key = jax.random.PRNGKey(0)
    kx, k1, k2, k3 = jax.random.split(key, 4)

    B = 8  # small batch
    x = jax.random.normal(kx, (B, FEATURES), jnp.float32)

    w1, b1 = init_linear(k1, FEATURES, HIDDEN1)
    w2, b2 = init_linear(k2, HIDDEN1, HIDDEN2)
    w3, b3 = init_linear(k3, HIDDEN2, CLASSES)

    out = mlp_forward(x, w1, b1, w2, b2, w3, b3)
    out = jax.block_until_ready(out)

    ref = reference_forward_bf16(x, w1, b1, w2, b2, w3, b3)
    assert out.shape == (B, CLASSES)
    assert jnp.allclose(out, ref, atol=1e-2, rtol=1e-2)

    # Also exercise the multi-tile path with a ragged final block (B=300,
    # TB=160 -> 2 grid steps, second block partial).
    B2 = 300
    x2 = jax.random.normal(kx, (B2, FEATURES), jnp.float32)
    out2 = jax.block_until_ready(mlp_forward(x2, w1, b1, w2, b2, w3, b3))
    ref2 = reference_forward_bf16(x2, w1, b1, w2, b2, w3, b3)
    assert out2.shape == (B2, CLASSES)
    assert jnp.allclose(out2, ref2, atol=1e-2, rtol=1e-2)

    print("KERNEL_OK")
</pallas_src>

<mosaic_0001>
module attributes {stable_mosaic.version = 11 : i64} {
  func.func @mlp_kernel(%arg0: i32, %arg1: memref<8x1024xbf16, #tpu.memory_space<vmem>>, %arg2: memref<1024x512xbf16, #tpu.memory_space<vmem>>, %arg3: memref<1x512xf32, #tpu.memory_space<vmem>>, %arg4: memref<512x20xf32, #tpu.memory_space<vmem>>, %arg5: memref<1x20xf32, #tpu.memory_space<vmem>>, %arg6: memref<20x4xf32, #tpu.memory_space<vmem>>, %arg7: memref<1x4xf32, #tpu.memory_space<vmem>>, %arg8: memref<8x4xf32, #tpu.memory_space<vmem>>) attributes {dimension_semantics = [#tpu.dimension_semantics<parallel>], iteration_bounds = array<i64: 1>, scalar_prefetch = 0 : i64, scratch_operands = 0 : i64, tpu.core_type = #tpu.core_type<tc>, window_params = [{transform_indices = @transform_0, window_bounds = array<i64: 8, 1024>}, {pipeline_mode = #tpu.pipeline_mode<synchronous>, transform_indices = @transform_1, window_bounds = array<i64: 1024, 512>}, {pipeline_mode = #tpu.pipeline_mode<synchronous>, transform_indices = @transform_2, window_bounds = array<i64: 1, 512>}, {pipeline_mode = #tpu.pipeline_mode<synchronous>, transform_indices = @transform_3, window_bounds = array<i64: 512, 20>}, {pipeline_mode = #tpu.pipeline_mode<synchronous>, transform_indices = @transform_4, window_bounds = array<i64: 1, 20>}, {pipeline_mode = #tpu.pipeline_mode<synchronous>, transform_indices = @transform_5, window_bounds = array<i64: 20, 4>}, {pipeline_mode = #tpu.pipeline_mode<synchronous>, transform_indices = @transform_6, window_bounds = array<i64: 1, 4>}, {transform_indices = @transform_7, window_bounds = array<i64: 8, 4>}]} {
    %c0 = arith.constant 0 : index
    %c0_0 = arith.constant 0 : index
    %0 = vector.load %arg1[%c0, %c0_0] : memref<8x1024xbf16, #tpu.memory_space<vmem>>, vector<8x1024xbf16>
    %c0_1 = arith.constant 0 : index
    %c0_2 = arith.constant 0 : index
    %1 = vector.load %arg2[%c0_1, %c0_2] : memref<1024x512xbf16, #tpu.memory_space<vmem>>, vector<1024x512xbf16>
    %cst = arith.constant dense<0.000000e+00> : vector<8x512xf32>
    %2 = tpu.matmul %0, %1, %cst {dimension_numbers = #tpu.dot_dimension_numbers<[1], [0], [0], [1], [0, 0, 1, 1], [], []>} : vector<8x1024xbf16>, vector<1024x512xbf16>, vector<8x512xf32> -> vector<8x512xf32>
    %c0_3 = arith.constant 0 : index
    %c0_4 = arith.constant 0 : index
    %3 = vector.load %arg3[%c0_3, %c0_4] : memref<1x512xf32, #tpu.memory_space<vmem>>, vector<1x512xf32>
    %4 = vector.broadcast %3 : vector<1x512xf32> to vector<8x512xf32>
    %5 = arith.addf %2, %4 : vector<8x512xf32>
    %cst_5 = arith.constant 0.000000e+00 : f32
    %6 = vector.broadcast %cst_5 : f32 to vector<8x512xf32>
    %7 = arith.maximumf %5, %6 : vector<8x512xf32>
    %c0_6 = arith.constant 0 : index
    %c0_7 = arith.constant 0 : index
    %8 = vector.load %arg4[%c0_6, %c0_7] : memref<512x20xf32, #tpu.memory_space<vmem>>, vector<512x20xf32>
    %cst_8 = arith.constant dense<0.000000e+00> : vector<8x20xf32>
    %9 = tpu.matmul %7, %8, %cst_8 {dimension_numbers = #tpu.dot_dimension_numbers<[1], [0], [0], [1], [0, 0, 1, 1], [], []>} : vector<8x512xf32>, vector<512x20xf32>, vector<8x20xf32> -> vector<8x20xf32>
    %c0_9 = arith.constant 0 : index
    %c0_10 = arith.constant 0 : index
    %10 = vector.load %arg5[%c0_9, %c0_10] : memref<1x20xf32, #tpu.memory_space<vmem>>, vector<1x20xf32>
    %11 = vector.broadcast %10 : vector<1x20xf32> to vector<8x20xf32>
    %12 = arith.addf %9, %11 : vector<8x20xf32>
    %cst_11 = arith.constant 0.000000e+00 : f32
    %13 = vector.broadcast %cst_11 : f32 to vector<8x20xf32>
    %14 = arith.maximumf %12, %13 : vector<8x20xf32>
    %c0_12 = arith.constant 0 : index
    %c0_13 = arith.constant 0 : index
    %15 = vector.load %arg6[%c0_12, %c0_13] : memref<20x4xf32, #tpu.memory_space<vmem>>, vector<20x4xf32>
    %cst_14 = arith.constant dense<0.000000e+00> : vector<8x4xf32>
    %16 = tpu.matmul %14, %15, %cst_14 {dimension_numbers = #tpu.dot_dimension_numbers<[1], [0], [0], [1], [0, 0, 1, 1], [], []>} : vector<8x20xf32>, vector<20x4xf32>, vector<8x4xf32> -> vector<8x4xf32>
    %c0_15 = arith.constant 0 : index
    %c0_16 = arith.constant 0 : index
    %17 = vector.load %arg7[%c0_15, %c0_16] : memref<1x4xf32, #tpu.memory_space<vmem>>, vector<1x4xf32>
    %18 = vector.broadcast %17 : vector<1x4xf32> to vector<8x4xf32>
    %19 = arith.addf %16, %18 : vector<8x4xf32>
    %c0_17 = arith.constant 0 : index
    %c0_18 = arith.constant 0 : index
    %20 = vector.load %arg8[%c0_17, %c0_18] : memref<8x4xf32, #tpu.memory_space<vmem>>, vector<8x4xf32>
    tpu.vector_store %arg8[%c0_17, %c0_18], %19 {strides = array<i32>} : memref<8x4xf32, #tpu.memory_space<vmem>>, vector<8x4xf32>,
    return
  }
  func.func @transform_0(%arg0: i32) -> (i32, i32) {
    %c0_i32 = arith.constant 0 : i32
    %c0_i32_0 = arith.constant 0 : i32
    return %arg0, %c0_i32 : i32, i32
  }
  func.func @transform_1(%arg0: i32) -> (i32, i32) {
    %c0_i32 = arith.constant 0 : i32
    %c0_i32_0 = arith.constant 0 : i32
    %c0_i32_1 = arith.constant 0 : i32
    return %c0_i32, %c0_i32_0 : i32, i32
  }
  func.func @transform_2(%arg0: i32) -> (i32, i32) {
    %c0_i32 = arith.constant 0 : i32
    %c0_i32_0 = arith.constant 0 : i32
    %c0_i32_1 = arith.constant 0 : i32
    return %c0_i32, %c0_i32_0 : i32, i32
  }
  func.func @transform_3(%arg0: i32) -> (i32, i32) {
    %c0_i32 = arith.constant 0 : i32
    %c0_i32_0 = arith.constant 0 : i32
    %c0_i32_1 = arith.constant 0 : i32
    return %c0_i32, %c0_i32_0 : i32, i32
  }
  func.func @transform_4(%arg0: i32) -> (i32, i32) {
    %c0_i32 = arith.constant 0 : i32
    %c0_i32_0 = arith.constant 0 : i32
    %c0_i32_1 = arith.constant 0 : i32
    return %c0_i32, %c0_i32_0 : i32, i32
  }
  func.func @transform_5(%arg0: i32) -> (i32, i32) {
    %c0_i32 = arith.constant 0 : i32
    %c0_i32_0 = arith.constant 0 : i32
    %c0_i32_1 = arith.constant 0 : i32
    return %c0_i32, %c0_i32_0 : i32, i32
  }
  func.func @transform_6(%arg0: i32) -> (i32, i32) {
    %c0_i32 = arith.constant 0 : i32
    %c0_i32_0 = arith.constant 0 : i32
    %c0_i32_1 = arith.constant 0 : i32
    return %c0_i32, %c0_i32_0 : i32, i32
  }
  func.func @transform_7(%arg0: i32) -> (i32, i32) {
    %c0_i32 = arith.constant 0 : i32
    %c0_i32_0 = arith.constant 0 : i32
    return %arg0, %c0_i32 : i32, i32
  }
}

</mosaic_0001>

<bundles_post_ra>
// kernel: tpu_custom_call.1
= control target key start
LH: loop header
LB: loop body
LE: loop exit
PB: predicated region body
PF: predicated region fallthrough
CT: control target
= control target key end

     0   :  { %12 = vsyncpa [#allocation3], 0  ;;  %s3137_s24 = smov [#allocation2]   ;;  %s3438_s0 = inlined_call_operand.vmem [shape: bf16[8,1024], index: 0, kind: input, shape index: {}]   ;;  %s3439_s1 = inlined_call_operand.hbm [shape: bf16[1024,512], index: 1, kind: input, shape index: {}]   ;;  %s3440_s2 = inlined_call_operand.vmem [shape: f32[1,512], index: 2, kind: input, shape index: {}]   ;;  %s3441_s3 = inlined_call_operand.vmem [shape: f32[512,20], index: 3, kind: input, shape index: {}]   ;;  %s3442_s4 = inlined_call_operand.vmem [shape: f32[1,20], index: 4, kind: input, shape index: {}]   ;;  %s3443_s5 = inlined_call_operand.vmem [shape: f32[20,4], index: 5, kind: input, shape index: {}]   ;;  %s3444_s6 = inlined_call_operand.vmem [shape: f32[1,4], index: 6, kind: input, shape index: {}]   ;;  %s3445_s7 = inlined_call_operand.vmem [shape: f32[8,4], index: 7, kind: output, shape index: {}]  }
   0x1   :  { %s20_s25 = sshll.u32 %s3137_s24, 4  ;;  %s3113_s28 = scalar_lea.hbm %s3439_s1, 32768  ;;  %s21_s25 = int_to_ptr.vmem [resolvable:$true] %s20_s25 }
   0x2   :  { %p3114_p0 = scmp.ne.s32.totalorder %s3439_s1, %s3113_s28  ;;  %p3117_p1 = scmp.lt.u32.totalorder %s3113_s28, %s3439_s1 }
   0x4   :  { %p3119_p2 = pnand %p3117_p1, %p3114_p0 }
   0x6   :  { %3122 = shalt.err (!%p3119_p2)
}
   0x7   :  { %s3123_s10 = scalar_lea.vmem %s21_s25, 32768  ;;  %p3128_p4 = scmp.lt.s32.totalorder %s21_s25, %s21_s25 }
   0x8   :  { %p3124_p3 = scmp.ne.s32.totalorder %s21_s25, %s3123_s10  ;;  %p3129_p5 = scmp.lt.s32.totalorder %s3123_s10, %s3123_s10 }
   0xa   :  { %p3130_p6 = por %p3129_p5, %p3128_p4 }
   0xc   :  { %p3131_p7 = pnand %p3130_p6, %p3124_p3 }
   0xe   :  { %3134 = shalt.err (!%p3131_p7)
}
   0xf   :  { %s3138_s11 = smov 256   ;;  %s3139_s12 = smov 16  }
  0x10   :  { %26 = dma.hbm_to_vmem [thread:$0]  %s3439_s1, 32768, %s21_s25, [#allocation3], %s3138_s11, %s3138_s11, %s3139_s12  }
  0x11   :  { %3135 = dma.done.wait [#allocation3], 32768  }
  0x12   :  { %3136 = vsyncadd [#allocation3], 4294934528  ;;  %v2721_v0 = vld [vmem:[#allocation2 + $0x4] ss:$16 sps:$4 sm:$0xff]   ;;  %v2723_v1 = vld [vmem:[#allocation2 + $0xc] ss:$16 sps:$4 sm:$0xff]  }
  0x13   :  { %1630 = vmatprep.subr.bf16.mxu0 %v2721_v0  ;;  %v2725_v2 = vld [vmem:[#allocation2] ss:$16 sps:$4 sm:$0xff]   ;;  %v2726_v3 = vld [vmem:[#allocation2 + $0x8] ss:$16 sps:$4 sm:$0xff]   ;;  %1794 = vmatprep.subr.bf16.mxu1 %v2723_v1  ;;  %v2727_v4 = vld [vmem:[#allocation2 + $0x24] ss:$16 sps:$4 sm:$0xff]  }
  0x14   :  { %1631 = vmatpush1.bf16.msra.mxu0 %v2725_v2  ;;  %1795 = vmatpush1.bf16.msra.mxu1 %v2726_v3  ;;  %v2729_v5 = vld [vmem:[#allocation2 + $0x2c] ss:$16 sps:$4 sm:$0xff]   ;;  %v2731_v6 = vld [vmem:[#allocation2 + $0x20] ss:$16 sps:$4 sm:$0xff]   ;;  %v2732_v7 = vld [vmem:[#allocation2 + $0x28] ss:$16 sps:$4 sm:$0xff]  }
  0x15   :  { %1632 = vmatprep.subr.bf16.mxu0 %v2727_v4  ;;  %1796 = vmatprep.subr.bf16.mxu1 %v2729_v5  ;;  %v2733_v8 = vld [vmem:[#allocation2 + $0x44] ss:$16 sps:$4 sm:$0xff]   ;;  %v2735_v9 = vld [vmem:[#allocation2 + $0x4c] ss:$16 sps:$4 sm:$0xff]   ;;  %v2737_v10 = vld [vmem:[#allocation2 + $0x40] ss:$16 sps:$4 sm:$0xff]  }
  0x16   :  { %v2738_v11 = vld [vmem:[#allocation2 + $0x48] ss:$16 sps:$4 sm:$0xff]   ;;  %v2739_v12 = vld [vmem:[#allocation2 + $0x64] ss:$16 sps:$4 sm:$0xff]   ;;  %v2741_v13 = vld [vmem:[#allocation2 + $0x6c] ss:$16 sps:$4 sm:$0xff]  }
  0x17   :  { %v2743_v14 = vld [vmem:[#allocation2 + $0x60] ss:$16 sps:$4 sm:$0xff]   ;;  %v2744_v15 = vld [vmem:[#allocation2 + $0x68] ss:$16 sps:$4 sm:$0xff]   ;;  %v2745_v16 = vld [vmem:[#allocation2 + $0x84] ss:$16 sps:$4 sm:$0xff]  }
  0x18   :  { %1633 = vmatpush1.bf16.msra.mxu0 %v2731_v6  ;;  %1797 = vmatpush1.bf16.msra.mxu1 %v2732_v7  ;;  %v2747_v17 = vld [vmem:[#allocation2 + $0x8c] ss:$16 sps:$4 sm:$0xff]   ;;  %v2749_v18 = vld [vmem:[#allocation2 + $0x80] ss:$16 sps:$4 sm:$0xff]   ;;  %v2750_v19 = vld [vmem:[#allocation2 + $0x88] ss:$16 sps:$4 sm:$0xff]  }
  0x19   :  { %1634 = vmatprep.subr.bf16.mxu0 %v2733_v8  ;;  %1798 = vmatprep.subr.bf16.mxu1 %v2735_v9  ;;  %v2751_v20 = vld [vmem:[#allocation2 + $0xa4] ss:$16 sps:$4 sm:$0xff]   ;;  %v2753_v21 = vld [vmem:[#allocation2 + $0xac] ss:$16 sps:$4 sm:$0xff]   ;;  %v2755_v22 = vld [vmem:[#allocation2 + $0xa0] ss:$16 sps:$4 sm:$0xff]  }
  0x1a   :  { %v2756_v23 = vld [vmem:[#allocation2 + $0xa8] ss:$16 sps:$4 sm:$0xff]   ;;  %v2757_v24 = vld [vmem:[#allocation2 + $0xc4] ss:$16 sps:$4 sm:$0xff]   ;;  %v2759_v25 = vld [vmem:[#allocation2 + $0xcc] ss:$16 sps:$4 sm:$0xff]  }
  0x1b   :  { %v2761_v26 = vld [vmem:[#allocation2 + $0xc0] ss:$16 sps:$4 sm:$0xff]   ;;  %v2762_v27 = vld [vmem:[#allocation2 + $0xc8] ss:$16 sps:$4 sm:$0xff]   ;;  %v2763_v28 = vld [vmem:[#allocation2 + $0xe4] ss:$16 sps:$4 sm:$0xff]  }
  0x1c   :  { %1635 = vmatpush1.bf16.msra.mxu0 %v2737_v10  ;;  %1799 = vmatpush1.bf16.msra.mxu1 %v2738_v11  ;;  %v2765_v29 = vld [vmem:[#allocation2 + $0xec] ss:$16 sps:$4 sm:$0xff]   ;;  %v2767_v30 = vld [vmem:[#allocation2 + $0xe0] ss:$16 sps:$4 sm:$0xff]   ;;  %v2768_v31 = vld [vmem:[#allocation2 + $0xe8] ss:$16 sps:$4 sm:$0xff]  }
  0x1d   :  { %1636 = vmatprep.subr.bf16.mxu0 %v2739_v12  ;;  %1800 = vmatprep.subr.bf16.mxu1 %v2741_v13  ;;  %v2769_v32 = vld [vmem:[#allocation2 + $0x104] ss:$16 sps:$4 sm:$0xff]   ;;  %v2771_v33 = vld [vmem:[#allocation2 + $0x10c] ss:$16 sps:$4 sm:$0xff]   ;;  %v2773_v34 = vld [vmem:[#allocation2 + $0x100] ss:$16 sps:$4 sm:$0xff]  }
  0x1e   :  { %v2774_v35 = vld [vmem:[#allocation2 + $0x108] ss:$16 sps:$4 sm:$0xff]   ;;  %v2775_v36 = vld [vmem:[#allocation2 + $0x124] ss:$16 sps:$4 sm:$0xff]   ;;  %v2777_v37 = vld [vmem:[#allocation2 + $0x12c] ss:$16 sps:$4 sm:$0xff]  }
  0x1f   :  { %v2779_v38 = vld [vmem:[#allocation2 + $0x120] ss:$16 sps:$4 sm:$0xff]   ;;  %v2780_v39 = vld [vmem:[#allocation2 + $0x128] ss:$16 sps:$4 sm:$0xff]   ;;  %v2781_v40 = vld [vmem:[#allocation2 + $0x144] ss:$16 sps:$4 sm:$0xff]  }
  0x20   :  { %1637 = vmatpush1.bf16.msra.mxu0 %v2743_v14  ;;  %1801 = vmatpush1.bf16.msra.mxu1 %v2744_v15  ;;  %v2783_v41 = vld [vmem:[#allocation2 + $0x14c] ss:$16 sps:$4 sm:$0xff]   ;;  %v2785_v42 = vld [vmem:[#allocation2 + $0x140] ss:$16 sps:$4 sm:$0xff]   ;;  %v2786_v43 = vld [vmem:[#allocation2 + $0x148] ss:$16 sps:$4 sm:$0xff]  }
  0x21   :  { %1638 = vmatprep.subr.bf16.mxu0 %v2745_v16  ;;  %1802 = vmatprep.subr.bf16.mxu1 %v2747_v17  ;;  %v2787_v44 = vld [vmem:[#allocation2 + $0x164] ss:$16 sps:$4 sm:$0xff]   ;;  %v2789_v45 = vld [vmem:[#allocation2 + $0x16c] ss:$16 sps:$4 sm:$0xff]   ;;  %v2791_v47 = vld [vmem:[#allocation2 + $0x160] ss:$16 sps:$4 sm:$0xff]  }
  0x22   :  { %v40_v46 = vld [vmem:[%s3438_s0] sm:$0xff]  ;;  %v2792_v49 = vld [vmem:[#allocation2 + $0x168] ss:$16 sps:$4 sm:$0xff]   ;;  %v2795_v51 = vld [vmem:[#allocation2 + $0x18c] ss:$16 sps:$4 sm:$0xff]   ;;  %vm2188_vm0 = vcmask 1043456  }
  0x23   :  { %v2270_v48 = vcombine.high %v40_v46, %v40_v46  ;;  %v2793_v50 = vld [vmem:[#allocation2 + $0x184] ss:$16 sps:$4 sm:$0xff]   ;;  %v2797_v52 = vld [vmem:[#allocation2 + $0x180] ss:$16 sps:$4 sm:$0xff]   ;;  %v2798_v53 = vld [vmem:[#allocation2 + $0x188] ss:$16 sps:$4 sm:$0xff]   ;;  %v2269_v4 = vcombine.low %v40_v46, %v40_v46 }
  0x24   :  { %1639 = vmatpush1.bf16.msra.mxu0 %v2749_v18  ;;  %1803 = vmatpush1.bf16.msra.mxu1 %v2750_v19  ;;  %v2799_v54 = vld [vmem:[#allocation2 + $0x1a4] ss:$16 sps:$4 sm:$0xff]   ;;  %v2801_v55 = vld [vmem:[#allocation2 + $0x1ac] ss:$16 sps:$4 sm:$0xff]   ;;  %v2803_v56 = vld [vmem:[#allocation2 + $0x1a0] ss:$16 sps:$4 sm:$0xff]  }
  0x25   :  { %1640 = vmatprep.subr.bf16.mxu0 %v2751_v20  ;;  %1804 = vmatprep.subr.bf16.mxu1 %v2753_v21  ;;  %v2804_v57 = vld [vmem:[#allocation2 + $0x1a8] ss:$16 sps:$4 sm:$0xff]   ;;  %v2805_v58 = vld [vmem:[#allocation2 + $0x1c4] ss:$16 sps:$4 sm:$0xff]   ;;  %v2807_v59 = vld [vmem:[#allocation2 + $0x1cc] ss:$16 sps:$4 sm:$0xff]  }
  0x26   :  { %1662 = vmatprep.mubr.bf16.mxu0 %v2270_v48  ;;  %1826 = vmatprep.mubr.bf16.mxu1 %v2270_v48  ;;  %v2809_v60 = vld [vmem:[#allocation2 + $0x1c0] ss:$16 sps:$4 sm:$0xff]   ;;  %v2810_v61 = vld [vmem:[#allocation2 + $0x1c8] ss:$16 sps:$4 sm:$0xff]   ;;  %v2811_v62 = vld [vmem:[#allocation2 + $0x1e4] ss:$16 sps:$4 sm:$0xff]  }
  0x27   :  { %v2813_v63 = vld [vmem:[#allocation2 + $0x1ec] ss:$16 sps:$4 sm:$0xff]   ;;  %v2815_v0 = vld [vmem:[#allocation2 + $0x1e0] ss:$16 sps:$4 sm:$0xff]   ;;  %v2816_v1 = vld [vmem:[#allocation2 + $0x1e8] ss:$16 sps:$4 sm:$0xff]  }
  0x28   :  { %1641 = vmatpush1.bf16.msra.mxu0 %v2755_v22  ;;  %1805 = vmatpush1.bf16.msra.mxu1 %v2756_v23  ;;  %v2821_v2 = vld [vmem:[#allocation2 + $0x204] ss:$16 sps:$4 sm:$0xff]   ;;  %v2824_v3 = vld [vmem:[#allocation2 + $0x20c] ss:$16 sps:$4 sm:$0xff]   ;;  %v2819_v5 = vld [vmem:[#allocation2 + $0x200] ss:$16 sps:$4 sm:$0xff]  }
  0x29   :  { %1642 = vmatprep.subr.bf16.mxu0 %v2757_v24  ;;  %1806 = vmatprep.subr.bf16.mxu1 %v2759_v25  ;;  %v2822_v6 = vld [vmem:[#allocation2 + $0x208] ss:$16 sps:$4 sm:$0xff]   ;;  %v2827_v7 = vld [vmem:[#allocation2 + $0x224] ss:$16 sps:$4 sm:$0xff]   ;;  %v2830_v8 = vld [vmem:[#allocation2 + $0x22c] ss:$16 sps:$4 sm:$0xff]  }
  0x2a   :  { %v2825_v9 = vld [vmem:[#allocation2 + $0x220] ss:$16 sps:$4 sm:$0xff]   ;;  %v2828_v10 = vld [vmem:[#allocation2 + $0x228] ss:$16 sps:$4 sm:$0xff]   ;;  %v2833_v11 = vld [vmem:[#allocation2 + $0x244] ss:$16 sps:$4 sm:$0xff]  }
  0x2b   :  { %v2836_v12 = vld [vmem:[#allocation2 + $0x24c] ss:$16 sps:$4 sm:$0xff]   ;;  %v2831_v13 = vld [vmem:[#allocation2 + $0x240] ss:$16 sps:$4 sm:$0xff]   ;;  %v2834_v14 = vld [vmem:[#allocation2 + $0x248] ss:$16 sps:$4 sm:$0xff]  }
  0x2c   :  { %1643 = vmatpush1.bf16.msra.mxu0 %v2761_v26  ;;  %1807 = vmatpush1.bf16.msra.mxu1 %v2762_v27  ;;  %v2839_v15 = vld [vmem:[#allocation2 + $0x264] ss:$16 sps:$4 sm:$0xff]   ;;  %v2842_v16 = vld [vmem:[#allocation2 + $0x26c] ss:$16 sps:$4 sm:$0xff]   ;;  %v2837_v17 = vld [vmem:[#allocation2 + $0x260] ss:$16 sps:$4 sm:$0xff]  }
  0x2d   :  { %1644 = vmatprep.subr.bf16.mxu0 %v2763_v28  ;;  %1808 = vmatprep.subr.bf16.mxu1 %v2765_v29  ;;  %v2840_v18 = vld [vmem:[#allocation2 + $0x268] ss:$16 sps:$4 sm:$0xff]   ;;  %v2845_v19 = vld [vmem:[#allocation2 + $0x284] ss:$16 sps:$4 sm:$0xff]   ;;  %v2848_v20 = vld [vmem:[#allocation2 + $0x28c] ss:$16 sps:$4 sm:$0xff]  }
  0x2e   :  { %v2843_v21 = vld [vmem:[#allocation2 + $0x280] ss:$16 sps:$4 sm:$0xff]   ;;  %v2846_v22 = vld [vmem:[#allocation2 + $0x288] ss:$16 sps:$4 sm:$0xff]   ;;  %v2851_v23 = vld [vmem:[#allocation2 + $0x2a4] ss:$16 sps:$4 sm:$0xff]  }
  0x2f   :  { %v2854_v24 = vld [vmem:[#allocation2 + $0x2ac] ss:$16 sps:$4 sm:$0xff]   ;;  %v2849_v25 = vld [vmem:[#allocation2 + $0x2a0] ss:$16 sps:$4 sm:$0xff]   ;;  %v2852_v26 = vld [vmem:[#allocation2 + $0x2a8] ss:$16 sps:$4 sm:$0xff]  }
  0x30   :  { %1645 = vmatpush1.bf16.msra.mxu0 %v2767_v30  ;;  %1809 = vmatpush1.bf16.msra.mxu1 %v2768_v31  ;;  %v2857_v27 = vld [vmem:[#allocation2 + $0x2c4] ss:$16 sps:$4 sm:$0xff]   ;;  %v2860_v28 = vld [vmem:[#allocation2 + $0x2cc] ss:$16 sps:$4 sm:$0xff]   ;;  %v2855_v31 = vld [vmem:[#allocation2 + $0x2c0] ss:$16 sps:$4 sm:$0xff]  }
  0x31   :  { %1646 = vmatprep.subr.bf16.mxu0 %v2769_v32  ;;  %1810 = vmatprep.subr.bf16.mxu1 %v2771_v33  ;;  %v3201_v29 = vld [vmem:[%s3438_s0 + $0x8] sm:$0xff]  ;;  %v2863_v33 = vld [vmem:[#allocation2 + $0x2e4] ss:$16 sps:$4 sm:$0xff]   ;;  %vm3142_vm1 = vmmov 0   ;;  %vm2184_vm2 = vcmask 162816   ;;  %vm2262_vm3 = vcmask 31744  }
  0x32   :  { %v2272_v30 = vcombine.high %v3201_v29, %v3201_v29  ;;  %v2858_v32 = vld [vmem:[#allocation2 + $0x2c8] ss:$16 sps:$4 sm:$0xff]   ;;  %v2884_v46 = vld [vmem:[#allocation2 + $0x34c] ss:$16 sps:$4 sm:$0xff]  }
  0x33   :  { %v2882_v48 = vld [vmem:[#allocation2 + $0x348] ss:$16 sps:$4 sm:$0xff]  }
  0x34   :  { %1647 = vmatpush1.bf16.msra.mxu0 %v2773_v34  ;;  %1811 = vmatpush1.bf16.msra.mxu1 %v2774_v35  ;;  %v2866_v34 = vld [vmem:[#allocation2 + $0x2ec] ss:$16 sps:$4 sm:$0xff]   ;;  %v2861_v35 = vld [vmem:[#allocation2 + $0x2e0] ss:$16 sps:$4 sm:$0xff]  }
  0x35   :  { %1648 = vmatprep.subr.bf16.mxu0 %v2775_v36  ;;  %1812 = vmatprep.subr.bf16.mxu1 %v2777_v37  ;;  %v2864_v36 = vld [vmem:[#allocation2 + $0x2e8] ss:$16 sps:$4 sm:$0xff]   ;;  %v2869_v37 = vld [vmem:[#allocation2 + $0x304] ss:$16 sps:$4 sm:$0xff]  }
  0x38   :  { %1649 = vmatpush1.bf16.msra.mxu0 %v2779_v38  ;;  %1813 = vmatpush1.bf16.msra.mxu1 %v2780_v39  ;;  %v2872_v38 = vld [vmem:[#allocation2 + $0x30c] ss:$16 sps:$4 sm:$0xff]   ;;  %v2867_v39 = vld [vmem:[#allocation2 + $0x300] ss:$16 sps:$4 sm:$0xff]  }
  0x39   :  { %1650 = vmatprep.subr.bf16.mxu0 %v2781_v40  ;;  %1814 = vmatprep.subr.bf16.mxu1 %v2783_v41  ;;  %v2870_v40 = vld [vmem:[#allocation2 + $0x308] ss:$16 sps:$4 sm:$0xff]   ;;  %v2875_v41 = vld [vmem:[#allocation2 + $0x324] ss:$16 sps:$4 sm:$0xff]  }
  0x3c   :  { %1651 = vmatpush1.bf16.msra.mxu0 %v2785_v42  ;;  %1815 = vmatpush1.bf16.msra.mxu1 %v2786_v43  ;;  %v2878_v42 = vld [vmem:[#allocation2 + $0x32c] ss:$16 sps:$4 sm:$0xff]   ;;  %v2873_v43 = vld [vmem:[#allocation2 + $0x320] ss:$16 sps:$4 sm:$0xff]  }
  0x3d   :  { %1652 = vmatprep.subr.bf16.mxu0 %v2787_v44  ;;  %1816 = vmatprep.subr.bf16.mxu1 %v2789_v45  ;;  %v2876_v44 = vld [vmem:[#allocation2 + $0x328] ss:$16 sps:$4 sm:$0xff]   ;;  %v2881_v45 = vld [vmem:[#allocation2 + $0x344] ss:$16 sps:$4 sm:$0xff]  }
  0x40   :  { %1653 = vmatpush1.bf16.msra.mxu0 %v2791_v47  ;;  %1817 = vmatpush1.bf16.msra.mxu1 %v2792_v49  ;;  %v2879_v47 = vld [vmem:[#allocation2 + $0x340] ss:$16 sps:$4 sm:$0xff]   ;;  %v2887_v49 = vld [vmem:[#allocation2 + $0x364] ss:$16 sps:$4 sm:$0xff]  }
  0x41   :  { %1654 = vmatprep.subr.bf16.mxu0 %v2793_v50  ;;  %1818 = vmatprep.subr.bf16.mxu1 %v2795_v51  ;;  %v2890_v50 = vld [vmem:[#allocation2 + $0x36c] ss:$16 sps:$4 sm:$0xff]   ;;  %v2885_v51 = vld [vmem:[#allocation2 + $0x360] ss:$16 sps:$4 sm:$0xff]  }
  0x44   :  { %1655 = vmatpush1.bf16.msra.mxu0 %v2797_v52  ;;  %1819 = vmatpush1.bf16.msra.mxu1 %v2798_v53  ;;  %v2888_v52 = vld [vmem:[#allocation2 + $0x368] ss:$16 sps:$4 sm:$0xff]   ;;  %v2893_v53 = vld [vmem:[#allocation2 + $0x384] ss:$16 sps:$4 sm:$0xff]  }
  0x45   :  { %1656 = vmatprep.subr.bf16.mxu0 %v2799_v54  ;;  %1820 = vmatprep.subr.bf16.mxu1 %v2801_v55  ;;  %v2896_v54 = vld [vmem:[#allocation2 + $0x38c] ss:$16 sps:$4 sm:$0xff]   ;;  %v2891_v55 = vld [vmem:[#allocation2 + $0x380] ss:$16 sps:$4 sm:$0xff]  }
  0x48   :  { %1657 = vmatpush1.bf16.msra.mxu0 %v2803_v56  ;;  %1821 = vmatpush1.bf16.msra.mxu1 %v2804_v57  ;;  %v2894_v56 = vld [vmem:[#allocation2 + $0x388] ss:$16 sps:$4 sm:$0xff]   ;;  %v2899_v57 = vld [vmem:[#allocation2 + $0x3a4] ss:$16 sps:$4 sm:$0xff]  }
  0x49   :  { %1658 = vmatprep.subr.bf16.mxu0 %v2805_v58  ;;  %1822 = vmatprep.subr.bf16.mxu1 %v2807_v59  ;;  %v2902_v58 = vld [vmem:[#allocation2 + $0x3ac] ss:$16 sps:$4 sm:$0xff]   ;;  %v2897_v59 = vld [vmem:[#allocation2 + $0x3a0] ss:$16 sps:$4 sm:$0xff]  }
  0x4c   :  { %1659 = vmatpush1.bf16.msra.mxu0 %v2809_v60  ;;  %1823 = vmatpush1.bf16.msra.mxu1 %v2810_v61  ;;  %v2900_v60 = vld [vmem:[#allocation2 + $0x3a8] ss:$16 sps:$4 sm:$0xff]   ;;  %v2905_v61 = vld [vmem:[#allocation2 + $0x3c4] ss:$16 sps:$4 sm:$0xff]  }
  0x4d   :  { %1660 = vmatprep.subr.bf16.mxu0 %v2811_v62  ;;  %1824 = vmatprep.subr.bf16.mxu1 %v2813_v63  ;;  %v2908_v62 = vld [vmem:[#allocation2 + $0x3cc] ss:$16 sps:$4 sm:$0xff]   ;;  %v2903_v63 = vld [vmem:[#allocation2 + $0x3c0] ss:$16 sps:$4 sm:$0xff]  }
  0x50   :  { %1661 = vmatpush1.bf16.msra.mxu0 %v2815_v0  ;;  %1825 = vmatpush1.bf16.msra.mxu1 %v2816_v1  ;;  %v2906_v0 = vld [vmem:[#allocation2 + $0x3c8] ss:$16 sps:$4 sm:$0xff]   ;;  %v2911_v1 = vld [vmem:[#allocation2 + $0x3e4] ss:$16 sps:$4 sm:$0xff]  }
  0x51   :  { %1671 = vmatprep.subr.bf16.mxu0 %v2821_v2  ;;  %1835 = vmatprep.subr.bf16.mxu1 %v2824_v3  ;;  %v2914_v2 = vld [vmem:[#allocation2 + $0x3ec] ss:$16 sps:$4 sm:$0xff]   ;;  %v2909_v3 = vld [vmem:[#allocation2 + $0x3e0] ss:$16 sps:$4 sm:$0xff]  }
  0x53   :  { %1663 = vmatmul.mubr.bf16.vlgmr.msra.gmra.mrb[0].mxu0 %v2269_v4  ;;  %1827 = vmatmul.mubr.bf16.vlgmr.msra.gmra.mrb[0].mxu1 %v2269_v4  ;;  %v2912_v4 = vld [vmem:[#allocation2 + $0x3e8] ss:$16 sps:$4 sm:$0xff]  }
  0x54   :  { %1672 = vmatpush1.bf16.msra.mxu0 %v2819_v5  ;;  %1836 = vmatpush1.bf16.msra.mxu1 %v2822_v6  ;;  %v2919_v5 = vld [vmem:[#allocation2 + $0x404] ss:$16 sps:$4 sm:$0xff]   ;;  %v2922_v6 = vld [vmem:[#allocation2 + $0x40c] ss:$16 sps:$4 sm:$0xff]  }
  0x55   :  { %1673 = vmatprep.subr.bf16.mxu0 %v2827_v7  ;;  %1837 = vmatprep.subr.bf16.mxu1 %v2830_v8  ;;  %v2271_v7 = vcombine.low %v3201_v29, %v3201_v29  ;;  %v2917_v8 = vld [vmem:[#allocation2 + $0x400] ss:$16 sps:$4 sm:$0xff]   ;;  %v2952_v29 = vld [vmem:[#allocation2 + $0x4ac] ss:$16 sps:$4 sm:$0xff]  }
  0x56   :  { %1703 = vmatprep.mubr.bf16.mxu0 %v2272_v30  ;;  %1867 = vmatprep.mubr.bf16.mxu1 %v2272_v30  ;;  %v2947_v30 = vld [vmem:[#allocation2 + $0x4a0] ss:$16 sps:$4 sm:$0xff]  }
  0x58   :  { %1674 = vmatpush1.bf16.msra.mxu0 %v2825_v9  ;;  %1838 = vmatpush1.bf16.msra.mxu1 %v2828_v10  ;;  %v2920_v9 = vld [vmem:[#allocation2 + $0x408] ss:$16 sps:$4 sm:$0xff]   ;;  %v2925_v10 = vld [vmem:[#allocation2 + $0x424] ss:$16 sps:$4 sm:$0xff]  }
  0x59   :  { %1675 = vmatprep.subr.bf16.mxu0 %v2833_v11  ;;  %1839 = vmatprep.subr.bf16.mxu1 %v2836_v12  ;;  %v3210_v11 = vld [vmem:[%s3438_s0 + $0x10] sm:$0xff]  ;;  %v2928_v12 = vld [vmem:[#allocation2 + $0x42c] ss:$16 sps:$4 sm:$0xff]  }
  0x5c   :  { %1676 = vmatpush1.bf16.msra.mxu0 %v2831_v13  ;;  %1840 = vmatpush1.bf16.msra.mxu1 %v2834_v14  ;;  %v2274_v13 = vcombine.high %v3210_v11, %v3210_v11  ;;  %v2923_v14 = vld [vmem:[#allocation2 + $0x420] ss:$16 sps:$4 sm:$0xff]  }
  0x5d   :  { %1677 = vmatprep.subr.bf16.mxu0 %v2839_v15  ;;  %1841 = vmatprep.subr.bf16.mxu1 %v2842_v16  ;;  %v2926_v15 = vld [vmem:[#allocation2 + $0x428] ss:$16 sps:$4 sm:$0xff]   ;;  %v2931_v16 = vld [vmem:[#allocation2 + $0x444] ss:$16 sps:$4 sm:$0xff]  }
  0x60   :  { %1678 = vmatpush1.bf16.msra.mxu0 %v2837_v17  ;;  %1842 = vmatpush1.bf16.msra.mxu1 %v2840_v18  ;;  %v2934_v17 = vld [vmem:[#allocation2 + $0x44c] ss:$16 sps:$4 sm:$0xff]   ;;  %v2929_v18 = vld [vmem:[#allocation2 + $0x440] ss:$16 sps:$4 sm:$0xff]  }
  0x61   :  { %1679 = vmatprep.subr.bf16.mxu0 %v2845_v19  ;;  %1843 = vmatprep.subr.bf16.mxu1 %v2848_v20  ;;  %v2932_v19 = vld [vmem:[#allocation2 + $0x448] ss:$16 sps:$4 sm:$0xff]   ;;  %v2937_v20 = vld [vmem:[#allocation2 + $0x464] ss:$16 sps:$4 sm:$0xff]  }
  0x64   :  { %1680 = vmatpush1.bf16.msra.mxu0 %v2843_v21  ;;  %1844 = vmatpush1.bf16.msra.mxu1 %v2846_v22  ;;  %v2940_v21 = vld [vmem:[#allocation2 + $0x46c] ss:$16 sps:$4 sm:$0xff]   ;;  %v2935_v22 = vld [vmem:[#allocation2 + $0x460] ss:$16 sps:$4 sm:$0xff]  }
  0x65   :  { %1681 = vmatprep.subr.bf16.mxu0 %v2851_v23  ;;  %1845 = vmatprep.subr.bf16.mxu1 %v2854_v24  ;;  %v2938_v23 = vld [vmem:[#allocation2 + $0x468] ss:$16 sps:$4 sm:$0xff]   ;;  %v2943_v24 = vld [vmem:[#allocation2 + $0x484] ss:$16 sps:$4 sm:$0xff]  }
  0x68   :  { %1682 = vmatpush1.bf16.msra.mxu0 %v2849_v25  ;;  %1846 = vmatpush1.bf16.msra.mxu1 %v2852_v26  ;;  %v2946_v25 = vld [vmem:[#allocation2 + $0x48c] ss:$16 sps:$4 sm:$0xff]   ;;  %v2941_v26 = vld [vmem:[#allocation2 + $0x480] ss:$16 sps:$4 sm:$0xff]  }
  0x69   :  { %1683 = vmatprep.subr.bf16.mxu0 %v2857_v27  ;;  %1847 = vmatprep.subr.bf16.mxu1 %v2860_v28  ;;  %v2944_v27 = vld [vmem:[#allocation2 + $0x488] ss:$16 sps:$4 sm:$0xff]   ;;  %v2949_v28 = vld [vmem:[#allocation2 + $0x4a4] ss:$16 sps:$4 sm:$0xff]  }
  0x6c   :  { %1684 = vmatpush1.bf16.msra.mxu0 %v2855_v31  ;;  %1848 = vmatpush1.bf16.msra.mxu1 %v2858_v32  ;;  %v2950_v31 = vld [vmem:[#allocation2 + $0x4a8] ss:$16 sps:$4 sm:$0xff]   ;;  %v2955_v32 = vld [vmem:[#allocation2 + $0x4c4] ss:$16 sps:$4 sm:$0xff]  }
  0x6d   :  { %1685 = vmatprep.subr.bf16.mxu0 %v2863_v33  ;;  %1849 = vmatprep.subr.bf16.mxu1 %v2866_v34  ;;  %v2958_v33 = vld [vmem:[#allocation2 + $0x4cc] ss:$16 sps:$4 sm:$0xff]   ;;  %v2953_v34 = vld [vmem:[#allocation2 + $0x4c0] ss:$16 sps:$4 sm:$0xff]  }
  0x70   :  { %1686 = vmatpush1.bf16.msra.mxu0 %v2861_v35  ;;  %1850 = vmatpush1.bf16.msra.mxu1 %v2864_v36  ;;  %v2956_v35 = vld [vmem:[#allocation2 + $0x4c8] ss:$16 sps:$4 sm:$0xff]   ;;  %v2961_v36 = vld [vmem:[#allocation2 + $0x4e4] ss:$16 sps:$4 sm:$0xff]  }
  0x71   :  { %1687 = vmatprep.subr.bf16.mxu0 %v2869_v37  ;;  %1851 = vmatprep.subr.bf16.mxu1 %v2872_v38  ;;  %v2964_v37 = vld [vmem:[#allocation2 + $0x4ec] ss:$16 sps:$4 sm:$0xff]   ;;  %v2959_v38 = vld [vmem:[#allocation2 + $0x4e0] ss:$16 sps:$4 sm:$0xff]  }
  0x74   :  { %1688 = vmatpush1.bf16.msra.mxu0 %v2867_v39  ;;  %1852 = vmatpush1.bf16.msra.mxu1 %v2870_v40  ;;  %v2962_v39 = vld [vmem:[#allocation2 + $0x4e8] ss:$16 sps:$4 sm:$0xff]   ;;  %v2967_v40 = vld [vmem:[#allocation2 + $0x504] ss:$16 sps:$4 sm:$0xff]  }
  0x75   :  { %1689 = vmatprep.subr.bf16.mxu0 %v2875_v41  ;;  %1853 = vmatprep.subr.bf16.mxu1 %v2878_v42  ;;  %v2970_v41 = vld [vmem:[#allocation2 + $0x50c] ss:$16 sps:$4 sm:$0xff]   ;;  %v2965_v42 = vld [vmem:[#allocation2 + $0x500] ss:$16 sps:$4 sm:$0xff]  }
  0x78   :  { %1690 = vmatpush1.bf16.msra.mxu0 %v2873_v43  ;;  %1854 = vmatpush1.bf16.msra.mxu1 %v2876_v44  ;;  %v2968_v43 = vld [vmem:[#allocation2 + $0x508] ss:$16 sps:$4 sm:$0xff]   ;;  %v2973_v44 = vld [vmem:[#allocation2 + $0x524] ss:$16 sps:$4 sm:$0xff]  }
  0x79   :  { %1691 = vmatprep.subr.bf16.mxu0 %v2881_v45  ;;  %1855 = vmatprep.subr.bf16.mxu1 %v2884_v46  ;;  %v2976_v45 = vld [vmem:[#allocation2 + $0x52c] ss:$16 sps:$4 sm:$0xff]   ;;  %v2971_v46 = vld [vmem:[#allocation2 + $0x520] ss:$16 sps:$4 sm:$0xff]  }
  0x7c   :  { %1692 = vmatpush1.bf16.msra.mxu0 %v2879_v47  ;;  %1856 = vmatpush1.bf16.msra.mxu1 %v2882_v48  ;;  %v2974_v47 = vld [vmem:[#allocation2 + $0x528] ss:$16 sps:$4 sm:$0xff]   ;;  %v2979_v48 = vld [vmem:[#allocation2 + $0x544] ss:$16 sps:$4 sm:$0xff]  }
  0x7d   :  { %1693 = vmatprep.subr.bf16.mxu0 %v2887_v49  ;;  %1857 = vmatprep.subr.bf16.mxu1 %v2890_v50  ;;  %v2982_v49 = vld [vmem:[#allocation2 + $0x54c] ss:$16 sps:$4 sm:$0xff]   ;;  %v2977_v50 = vld [vmem:[#allocation2 + $0x540] ss:$16 sps:$4 sm:$0xff]  }
  0x80   :  { %1694 = vmatpush1.bf16.msra.mxu0 %v2885_v51  ;;  %1858 = vmatpush1.bf16.msra.mxu1 %v2888_v52  ;;  %v2980_v51 = vld [vmem:[#allocation2 + $0x548] ss:$16 sps:$4 sm:$0xff]   ;;  %v2985_v52 = vld [vmem:[#allocation2 + $0x564] ss:$16 sps:$4 sm:$0xff]  }
  0x81   :  { %1695 = vmatprep.subr.bf16.mxu0 %v2893_v53  ;;  %1859 = vmatprep.subr.bf16.mxu1 %v2896_v54  ;;  %v2988_v53 = vld [vmem:[#allocation2 + $0x56c] ss:$16 sps:$4 sm:$0xff]   ;;  %v2983_v54 = vld [vmem:[#allocation2 + $0x560] ss:$16 sps:$4 sm:$0xff]  }
  0x84   :  { %1696 = vmatpush1.bf16.msra.mxu0 %v2891_v55  ;;  %1860 = vmatpush1.bf16.msra.mxu1 %v2894_v56  ;;  %v2986_v55 = vld [vmem:[#allocation2 + $0x568] ss:$16 sps:$4 sm:$0xff]   ;;  %v2991_v56 = vld [vmem:[#allocation2 + $0x584] ss:$16 sps:$4 sm:$0xff]  }
  0x85   :  { %1697 = vmatprep.subr.bf16.mxu0 %v2899_v57  ;;  %1861 = vmatprep.subr.bf16.mxu1 %v2902_v58  ;;  %v2994_v57 = vld [vmem:[#allocation2 + $0x58c] ss:$16 sps:$4 sm:$0xff]   ;;  %v2989_v58 = vld [vmem:[#allocation2 + $0x580] ss:$16 sps:$4 sm:$0xff]  }
  0x88   :  { %1698 = vmatpush1.bf16.msra.mxu0 %v2897_v59  ;;  %1862 = vmatpush1.bf16.msra.mxu1 %v2900_v60  ;;  %v2992_v59 = vld [vmem:[#allocation2 + $0x588] ss:$16 sps:$4 sm:$0xff]   ;;  %v2997_v60 = vld [vmem:[#allocation2 + $0x5a4] ss:$16 sps:$4 sm:$0xff]  }
  0x89   :  { %1699 = vmatprep.subr.bf16.mxu0 %v2905_v61  ;;  %1863 = vmatprep.subr.bf16.mxu1 %v2908_v62  ;;  %v3000_v61 = vld [vmem:[#allocation2 + $0x5ac] ss:$16 sps:$4 sm:$0xff]   ;;  %v2995_v62 = vld [vmem:[#allocation2 + $0x5a0] ss:$16 sps:$4 sm:$0xff]  }
  0x8c   :  { %1700 = vmatpush1.bf16.msra.mxu0 %v2903_v63  ;;  %1864 = vmatpush1.bf16.msra.mxu1 %v2906_v0  ;;  %v2998_v63 = vld [vmem:[#allocation2 + $0x5a8] ss:$16 sps:$4 sm:$0xff]   ;;  %v3003_v0 = vld [vmem:[#allocation2 + $0x5c4] ss:$16 sps:$4 sm:$0xff]  }
  0x8d   :  { %1701 = vmatprep.subr.bf16.mxu0 %v2911_v1  ;;  %1865 = vmatprep.subr.bf16.mxu1 %v2914_v2  ;;  %v3006_v1 = vld [vmem:[#allocation2 + $0x5cc] ss:$16 sps:$4 sm:$0xff]   ;;  %v3001_v2 = vld [vmem:[#allocation2 + $0x5c0] ss:$16 sps:$4 sm:$0xff]  }
  0x90   :  { %1702 = vmatpush1.bf16.msra.mxu0 %v2909_v3  ;;  %1866 = vmatpush1.bf16.msra.mxu1 %v2912_v4  ;;  %v3004_v3 = vld [vmem:[#allocation2 + $0x5c8] ss:$16 sps:$4 sm:$0xff]   ;;  %v3009_v4 = vld [vmem:[#allocation2 + $0x5e4] ss:$16 sps:$4 sm:$0xff]  }
  0x91   :  { %1712 = vmatprep.subr.bf16.mxu0 %v2919_v5  ;;  %1876 = vmatprep.subr.bf16.mxu1 %v2922_v6  ;;  %v3012_v5 = vld [vmem:[#allocation2 + $0x5ec] ss:$16 sps:$4 sm:$0xff]   ;;  %v3007_v6 = vld [vmem:[#allocation2 + $0x5e0] ss:$16 sps:$4 sm:$0xff]  }
  0x93   :  { %1704 = vmatmul.mubr.bf16.vlgmr.msra.gmra.mrb[0].mxu0 %v2271_v7  ;;  %1868 = vmatmul.mubr.bf16.vlgmr.msra.gmra.mrb[0].mxu1 %v2271_v7  ;;  %v3010_v7 = vld [vmem:[#allocation2 + $0x5e8] ss:$16 sps:$4 sm:$0xff]  }
  0x94   :  { %1713 = vmatpush1.bf16.msra.mxu0 %v2917_v8  ;;  %1877 = vmatpush1.bf16.msra.mxu1 %v2920_v9  ;;  %v3017_v8 = vld [vmem:[#allocation2 + $0x604] ss:$16 sps:$4 sm:$0xff]   ;;  %v3020_v9 = vld [vmem:[#allocation2 + $0x60c] ss:$16 sps:$4 sm:$0xff]  }
  0x95   :  { %1714 = vmatprep.subr.bf16.mxu0 %v2925_v10  ;;  %1878 = vmatprep.subr.bf16.mxu1 %v2928_v12  ;;  %v2273_v10 = vcombine.low %v3210_v11, %v3210_v11  ;;  %v3219_v12 = vld [vmem:[%s3438_s0 + $0x18] sm:$0xff]  ;;  %v3021_v11 = vld [vmem:[#allocation2 + $0x620] ss:$16 sps:$4 sm:$0xff]  }
  0x96   :  { %1744 = vmatprep.mubr.bf16.mxu0 %v2274_v13  ;;  %1908 = vmatprep.mubr.bf16.mxu1 %v2274_v13  ;;  %v3015_v13 = vld [vmem:[#allocation2 + $0x600] ss:$16 sps:$4 sm:$0xff]  }
  0x98   :  { %1715 = vmatpush1.bf16.msra.mxu0 %v2923_v14  ;;  %1879 = vmatpush1.bf16.msra.mxu1 %v2926_v15  ;;  %v3018_v14 = vld [vmem:[#allocation2 + $0x608] ss:$16 sps:$4 sm:$0xff]   ;;  %v3023_v15 = vld [vmem:[#allocation2 + $0x624] ss:$16 sps:$4 sm:$0xff]  }
  0x99   :  { %1716 = vmatprep.subr.bf16.mxu0 %v2931_v16  ;;  %1880 = vmatprep.subr.bf16.mxu1 %v2934_v17  ;;  %v3026_v16 = vld [vmem:[#allocation2 + $0x62c] ss:$16 sps:$4 sm:$0xff]   ;;  %v2276_v17 = vcombine.high %v3219_v12, %v3219_v12 }
  0x9c   :  { %1717 = vmatpush1.bf16.msra.mxu0 %v2929_v18  ;;  %1881 = vmatpush1.bf16.msra.mxu1 %v2932_v19  ;;  %v3024_v18 = vld [vmem:[#allocation2 + $0x628] ss:$16 sps:$4 sm:$0xff]   ;;  %v3029_v19 = vld [vmem:[#allocation2 + $0x644] ss:$16 sps:$4 sm:$0xff]  }
  0x9d   :  { %1718 = vmatprep.subr.bf16.mxu0 %v2937_v20  ;;  %1882 = vmatprep.subr.bf16.mxu1 %v2940_v21  ;;  %v3032_v20 = vld [vmem:[#allocation2 + $0x64c] ss:$16 sps:$4 sm:$0xff]   ;;  %v3027_v21 = vld [vmem:[#allocation2 + $0x640] ss:$16 sps:$4 sm:$0xff]  }
  0xa0   :  { %1719 = vmatpush1.bf16.msra.mxu0 %v2935_v22  ;;  %1883 = vmatpush1.bf16.msra.mxu1 %v2938_v23  ;;  %v3030_v22 = vld [vmem:[#allocation2 + $0x648] ss:$16 sps:$4 sm:$0xff]   ;;  %v3035_v23 = vld [vmem:[#allocation2 + $0x664] ss:$16 sps:$4 sm:$0xff]  }
  0xa1   :  { %1720 = vmatprep.subr.bf16.mxu0 %v2943_v24  ;;  %1884 = vmatprep.subr.bf16.mxu1 %v2946_v25  ;;  %v3038_v24 = vld [vmem:[#allocation2 + $0x66c] ss:$16 sps:$4 sm:$0xff]   ;;  %v3033_v25 = vld [vmem:[#allocation2 + $0x660] ss:$16 sps:$4 sm:$0xff]  }
  0xa4   :  { %1721 = vmatpush1.bf16.msra.mxu0 %v2941_v26  ;;  %1885 = vmatpush1.bf16.msra.mxu1 %v2944_v27  ;;  %v3036_v26 = vld [vmem:[#allocation2 + $0x668] ss:$16 sps:$4 sm:$0xff]   ;;  %v3041_v27 = vld [vmem:[#allocation2 + $0x684] ss:$16 sps:$4 sm:$0xff]  }
  0xa5   :  { %1722 = vmatprep.subr.bf16.mxu0 %v2949_v28  ;;  %1886 = vmatprep.subr.bf16.mxu1 %v2952_v29  ;;  %v3044_v28 = vld [vmem:[#allocation2 + $0x68c] ss:$16 sps:$4 sm:$0xff]   ;;  %v3039_v29 = vld [vmem:[#allocation2 + $0x680] ss:$16 sps:$4 sm:$0xff]  }
  0xa8   :  { %1723 = vmatpush1.bf16.msra.mxu0 %v2947_v30  ;;  %1887 = vmatpush1.bf16.msra.mxu1 %v2950_v31  ;;  %v3042_v30 = vld [vmem:[#allocation2 + $0x688] ss:$16 sps:$4 sm:$0xff]   ;;  %v3047_v31 = vld [vmem:[#allocation2 + $0x6a4] ss:$16 sps:$4 sm:$0xff]  }
  0xa9   :  { %1724 = vmatprep.subr.bf16.mxu0 %v2955_v32  ;;  %1888 = vmatprep.subr.bf16.mxu1 %v2958_v33  ;;  %v3050_v32 = vld [vmem:[#allocation2 + $0x6ac] ss:$16 sps:$4 sm:$0xff]   ;;  %v3045_v33 = vld [vmem:[#allocation2 + $0x6a0] ss:$16 sps:$4 sm:$0xff]  }
  0xac   :  { %1725 = vmatpush1.bf16.msra.mxu0 %v2953_v34  ;;  %1889 = vmatpush1.bf16.msra.mxu1 %v2956_v35  ;;  %v3048_v34 = vld [vmem:[#allocation2 + $0x6a8] ss:$16 sps:$4 sm:$0xff]   ;;  %v3053_v35 = vld [vmem:[#allocation2 + $0x6c4] ss:$16 sps:$4 sm:$0xff]  }
  0xad   :  { %1726 = vmatprep.subr.bf16.mxu0 %v2961_v36  ;;  %1890 = vmatprep.subr.bf16.mxu1 %v2964_v37  ;;  %v3056_v36 = vld [vmem:[#allocation2 + $0x6cc] ss:$16 sps:$4 sm:$0xff]   ;;  %v3051_v37 = vld [vmem:[#allocation2 + $0x6c0] ss:$16 sps:$4 sm:$0xff]  }
  0xb0   :  { %1727 = vmatpush1.bf16.msra.mxu0 %v2959_v38  ;;  %1891 = vmatpush1.bf16.msra.mxu1 %v2962_v39  ;;  %v3054_v38 = vld [vmem:[#allocation2 + $0x6c8] ss:$16 sps:$4 sm:$0xff]   ;;  %v3059_v39 = vld [vmem:[#allocation2 + $0x6e4] ss:$16 sps:$4 sm:$0xff]  }
  0xb1   :  { %1728 = vmatprep.subr.bf16.mxu0 %v2967_v40  ;;  %1892 = vmatprep.subr.bf16.mxu1 %v2970_v41  ;;  %v3062_v40 = vld [vmem:[#allocation2 + $0x6ec] ss:$16 sps:$4 sm:$0xff]   ;;  %v3057_v41 = vld [vmem:[#allocation2 + $0x6e0] ss:$16 sps:$4 sm:$0xff]  }
  0xb4   :  { %1729 = vmatpush1.bf16.msra.mxu0 %v2965_v42  ;;  %1893 = vmatpush1.bf16.msra.mxu1 %v2968_v43  ;;  %v3060_v42 = vld [vmem:[#allocation2 + $0x6e8] ss:$16 sps:$4 sm:$0xff]   ;;  %v3065_v43 = vld [vmem:[#allocation2 + $0x704] ss:$16 sps:$4 sm:$0xff]  }
  0xb5   :  { %1730 = vmatprep.subr.bf16.mxu0 %v2973_v44  ;;  %1894 = vmatprep.subr.bf16.mxu1 %v2976_v45  ;;  %v3068_v44 = vld [vmem:[#allocation2 + $0x70c] ss:$16 sps:$4 sm:$0xff]   ;;  %v3063_v45 = vld [vmem:[#allocation2 + $0x700] ss:$16 sps:$4 sm:$0xff]  }
  0xb8   :  { %1731 = vmatpush1.bf16.msra.mxu0 %v2971_v46  ;;  %1895 = vmatpush1.bf16.msra.mxu1 %v2974_v47  ;;  %v3066_v46 = vld [vmem:[#allocation2 + $0x708] ss:$16 sps:$4 sm:$0xff]   ;;  %v3071_v47 = vld [vmem:[#allocation2 + $0x724] ss:$16 sps:$4 sm:$0xff]  }
  0xb9   :  { %1732 = vmatprep.subr.bf16.mxu0 %v2979_v48  ;;  %1896 = vmatprep.subr.bf16.mxu1 %v2982_v49  ;;  %v3074_v48 = vld [vmem:[#allocation2 + $0x72c] ss:$16 sps:$4 sm:$0xff]   ;;  %v3069_v49 = vld [vmem:[#allocation2 + $0x720] ss:$16 sps:$4 sm:$0xff]  }
  0xbc   :  { %1733 = vmatpush1.bf16.msra.mxu0 %v2977_v50  ;;  %1897 = vmatpush1.bf16.msra.mxu1 %v2980_v51  ;;  %v3072_v50 = vld [vmem:[#allocation2 + $0x728] ss:$16 sps:$4 sm:$0xff]   ;;  %v3077_v51 = vld [vmem:[#allocation2 + $0x744] ss:$16 sps:$4 sm:$0xff]  }
  0xbd   :  { %1734 = vmatprep.subr.bf16.mxu0 %v2985_v52  ;;  %1898 = vmatprep.subr.bf16.mxu1 %v2988_v53  ;;  %v3080_v52 = vld [vmem:[#allocation2 + $0x74c] ss:$16 sps:$4 sm:$0xff]   ;;  %v3075_v53 = vld [vmem:[#allocation2 + $0x740] ss:$16 sps:$4 sm:$0xff]  }
  0xc0   :  { %1735 = vmatpush1.bf16.msra.mxu0 %v2983_v54  ;;  %1899 = vmatpush1.bf16.msra.mxu1 %v2986_v55  ;;  %v3078_v54 = vld [vmem:[#allocation2 + $0x748] ss:$16 sps:$4 sm:$0xff]   ;;  %v3083_v55 = vld [vmem:[#allocation2 + $0x764] ss:$16 sps:$4 sm:$0xff]  }
  0xc1   :  { %1736 = vmatprep.subr.bf16.mxu0 %v2991_v56  ;;  %1900 = vmatprep.subr.bf16.mxu1 %v2994_v57  ;;  %v3086_v56 = vld [vmem:[#allocation2 + $0x76c] ss:$16 sps:$4 sm:$0xff]   ;;  %v3081_v57 = vld [vmem:[#allocation2 + $0x760] ss:$16 sps:$4 sm:$0xff]  }
  0xc4   :  { %1737 = vmatpush1.bf16.msra.mxu0 %v2989_v58  ;;  %1901 = vmatpush1.bf16.msra.mxu1 %v2992_v59  ;;  %v3084_v58 = vld [vmem:[#allocation2 + $0x768] ss:$16 sps:$4 sm:$0xff]   ;;  %v3089_v59 = vld [vmem:[#allocation2 + $0x784] ss:$16 sps:$4 sm:$0xff]  }
  0xc5   :  { %1738 = vmatprep.subr.bf16.mxu0 %v2997_v60  ;;  %1902 = vmatprep.subr.bf16.mxu1 %v3000_v61  ;;  %v3092_v60 = vld [vmem:[#allocation2 + $0x78c] ss:$16 sps:$4 sm:$0xff]   ;;  %v3087_v61 = vld [vmem:[#allocation2 + $0x780] ss:$16 sps:$4 sm:$0xff]  }
  0xc8   :  { %1739 = vmatpush1.bf16.msra.mxu0 %v2995_v62  ;;  %1903 = vmatpush1.bf16.msra.mxu1 %v2998_v63  ;;  %v3090_v62 = vld [vmem:[#allocation2 + $0x788] ss:$16 sps:$4 sm:$0xff]   ;;  %v3095_v63 = vld [vmem:[#allocation2 + $0x7a4] ss:$16 sps:$4 sm:$0xff]  }
  0xc9   :  { %1740 = vmatprep.subr.bf16.mxu0 %v3003_v0  ;;  %1904 = vmatprep.subr.bf16.mxu1 %v3006_v1  ;;  %v3098_v0 = vld [vmem:[#allocation2 + $0x7ac] ss:$16 sps:$4 sm:$0xff]   ;;  %v3093_v1 = vld [vmem:[#allocation2 + $0x7a0] ss:$16 sps:$4 sm:$0xff]  }
  0xcc   :  { %1741 = vmatpush1.bf16.msra.mxu0 %v3001_v2  ;;  %1905 = vmatpush1.bf16.msra.mxu1 %v3004_v3  ;;  %v3096_v2 = vld [vmem:[#allocation2 + $0x7a8] ss:$16 sps:$4 sm:$0xff]   ;;  %v3101_v3 = vld [vmem:[#allocation2 + $0x7c4] ss:$16 sps:$4 sm:$0xff]  }
  0xcd   :  { %1742 = vmatprep.subr.bf16.mxu0 %v3009_v4  ;;  %1906 = vmatprep.subr.bf16.mxu1 %v3012_v5  ;;  %v3104_v4 = vld [vmem:[#allocation2 + $0x7cc] ss:$16 sps:$4 sm:$0xff]   ;;  %v3099_v5 = vld [vmem:[#allocation2 + $0x7c0] ss:$16 sps:$4 sm:$0xff]  }
  0xd0   :  { %1743 = vmatpush1.bf16.msra.mxu0 %v3007_v6  ;;  %1907 = vmatpush1.bf16.msra.mxu1 %v3010_v7  ;;  %v3102_v6 = vld [vmem:[#allocation2 + $0x7c8] ss:$16 sps:$4 sm:$0xff]   ;;  %v3107_v7 = vld [vmem:[#allocation2 + $0x7e4] ss:$16 sps:$4 sm:$0xff]  }
  0xd1   :  { %1753 = vmatprep.subr.bf16.mxu0 %v3017_v8  ;;  %1917 = vmatprep.subr.bf16.mxu1 %v3020_v9  ;;  %v3110_v8 = vld [vmem:[#allocation2 + $0x7ec] ss:$16 sps:$4 sm:$0xff]   ;;  %v1978_v9 = vld [vmem:[%s3441_s3 + $0x80] sm:$0xff] }
  0xd3   :  { %1745 = vmatmul.mubr.bf16.vlgmr.msra.gmra.mrb[0].mxu0 %v2273_v10  ;;  %1909 = vmatmul.mubr.bf16.vlgmr.msra.gmra.mrb[0].mxu1 %v2273_v10  ;;  %v1979_v10 = vld [vmem:[%s3441_s3 + $0x88] sm:$0xff] }
  0xd4   :  { %1754 = vmatpush1.bf16.msra.mxu0 %v3015_v13  ;;  %1918 = vmatpush1.bf16.msra.mxu1 %v3018_v14  ;;  %v2010_v13 = vld [vmem:[%s3441_s3 + $0x180] sm:$0xff]  ;;  %v2011_v14 = vld [vmem:[%s3441_s3 + $0x188] sm:$0xff] }
  0xd5   :  { %1755 = vmatprep.subr.bf16.mxu0 %v3023_v15  ;;  %1919 = vmatprep.subr.bf16.mxu1 %v3026_v16  ;;  %v3105_v15 = vld [vmem:[#allocation2 + $0x7e0] ss:$16 sps:$4 sm:$0xff]   ;;  %v3108_v16 = vld [vmem:[#allocation2 + $0x7e8] ss:$16 sps:$4 sm:$0xff]  }
  0xd6   :  { %1785 = vmatprep.mubr.bf16.mxu0 %v2276_v17  ;;  %1949 = vmatprep.mubr.bf16.mxu1 %v2276_v17  ;;  %v1962_v17 = vld [vmem:[%s3441_s3] sm:$0xff] }
  0xd8   :  { %1756 = vmatpush1.bf16.msra.mxu0 %v3021_v11  ;;  %1920 = vmatpush1.bf16.msra.mxu1 %v3024_v18  ;;  %v1963_v11 = vld [vmem:[%s3441_s3 + $0x8] sm:$0xff]  ;;  %v2620_v18 = vpack.c.bf16 %v1979_v10, %v1978_v9  ;;  %v2021_v9 = vld [vmem:[%s3441_s3 + $0x1d8] sm:$0xff] }
  0xd9   :  { %1757 = vmatprep.subr.bf16.mxu0 %v3029_v19  ;;  %1921 = vmatprep.subr.bf16.mxu1 %v3032_v20  ;;  %v2652_v19 = vpack.c.bf16 %v2011_v14, %v2010_v13  ;;  %v1994_v20 = vld [vmem:[%s3441_s3 + $0x100] sm:$0xff]  ;;  %v1972_v14 = vld [vmem:[%s3441_s3 + $0x50] sm:$0xff] }
  0xdc   :  { %1758 = vmatpush1.bf16.msra.mxu0 %v3027_v21  ;;  %1922 = vmatpush1.bf16.msra.mxu1 %v3030_v22  ;;  %v1995_v21 = vld [vmem:[%s3441_s3 + $0x108] sm:$0xff]  ;;  %v1980_v22 = vld [vmem:[%s3441_s3 + $0x90] sm:$0xff] }
  0xdd   :  { %1759 = vmatprep.subr.bf16.mxu0 %v3035_v23  ;;  %1923 = vmatprep.subr.bf16.mxu1 %v3038_v24  ;;  %v1981_v23 = vld [vmem:[%s3441_s3 + $0x98] sm:$0xff]  ;;  %v2012_v24 = vld [vmem:[%s3441_s3 + $0x190] sm:$0xff] }
  0xe0   :  { %1760 = vmatpush1.bf16.msra.mxu0 %v3033_v25  ;;  %1924 = vmatpush1.bf16.msra.mxu1 %v3036_v26  ;;  %v2013_v25 = vld [vmem:[%s3441_s3 + $0x198] sm:$0xff]  ;;  %v2275_v26 = vcombine.low %v3219_v12, %v3219_v12  ;;  %v1996_v12 = vld [vmem:[%s3441_s3 + $0x110] sm:$0xff] }
  0xe1   :  { %1761 = vmatprep.subr.bf16.mxu0 %v3041_v27  ;;  %1925 = vmatprep.subr.bf16.mxu1 %v3044_v28  ;;  %v2622_v27 = vpack.c.bf16 %v1963_v11, %v1962_v17  ;;  %v2654_v28 = vpack.c.bf16 %v1995_v21, %v1994_v20  ;;  %v2004_v11 = vld [vmem:[%s3441_s3 + $0x150] sm:$0xff]  ;;  %v1991_v20 = vld [vmem:[%s3441_s3 + $0xe8] sm:$0xff]  ;;  %v2022_v21 = vld [vmem:[%s3441_s3 + $0x1e0] sm:$0xff] }
  0xe4   :  { %1762 = vmatpush1.bf16.msra.mxu0 %v3039_v29  ;;  %1926 = vmatpush1.bf16.msra.mxu1 %v3042_v30  ;;  %v1964_v29 = vld [vmem:[%s3441_s3 + $0x10] sm:$0xff]  ;;  %v1965_v30 = vld [vmem:[%s3441_s3 + $0x18] sm:$0xff] }
  0xe5   :  { %1763 = vmatprep.subr.bf16.mxu0 %v3047_v31  ;;  %1927 = vmatprep.subr.bf16.mxu1 %v3050_v32  ;;  %v2624_v31 = vpack.c.bf16 %v1981_v23, %v1980_v22  ;;  %v2656_v32 = vpack.c.bf16 %v2013_v25, %v2012_v24  ;;  %v2023_v22 = vld [vmem:[%s3441_s3 + $0x1e8] sm:$0xff] }
  0xe8   :  { %1764 = vmatpush1.bf16.msra.mxu0 %v3045_v33  ;;  %1928 = vmatpush1.bf16.msra.mxu1 %v3048_v34  ;;  %v1997_v33 = vld [vmem:[%s3441_s3 + $0x118] sm:$0xff]  ;;  %v1982_v34 = vld [vmem:[%s3441_s3 + $0xa0] sm:$0xff] }
  0xe9   :  { %1765 = vmatprep.subr.bf16.mxu0 %v3053_v35  ;;  %1929 = vmatprep.subr.bf16.mxu1 %v3056_v36  ;;  %v1983_v35 = vld [vmem:[%s3441_s3 + $0xa8] sm:$0xff]  ;;  %v2014_v36 = vld [vmem:[%s3441_s3 + $0x1a0] sm:$0xff] }
  0xec   :  { %1766 = vmatpush1.bf16.msra.mxu0 %v3051_v37  ;;  %1930 = vmatpush1.bf16.msra.mxu1 %v3054_v38  ;;  %v2015_v37 = vld [vmem:[%s3441_s3 + $0x1a8] sm:$0xff]  ;;  %v2626_v38 = vpack.c.bf16 %v1965_v30, %v1964_v29  ;;  %v2006_v29 = vld [vmem:[%s3441_s3 + $0x160] sm:$0xff] }
  0xed   :  { %1767 = vmatprep.subr.bf16.mxu0 %v3059_v39  ;;  %1931 = vmatprep.subr.bf16.mxu1 %v3062_v40  ;;  %v2658_v39 = vpack.c.bf16 %v1997_v33, %v1996_v12  ;;  %v1966_v40 = vld [vmem:[%s3441_s3 + $0x20] sm:$0xff]  ;;  %v1992_v12 = vld [vmem:[%s3441_s3 + $0xf0] sm:$0xff]  ;;  %v1993_v33 = vld [vmem:[%s3441_s3 + $0xf8] sm:$0xff] }
  0xf0   :  { %1768 = vmatpush1.bf16.msra.mxu0 %v3057_v41  ;;  %1932 = vmatpush1.bf16.msra.mxu1 %v3060_v42  ;;  %v1967_v41 = vld [vmem:[%s3441_s3 + $0x28] sm:$0xff]  ;;  %v2628_v42 = vpack.c.bf16 %v1983_v35, %v1982_v34  ;;  %v2024_v34 = vld [vmem:[%s3441_s3 + $0x1f0] sm:$0xff]  ;;  %v2648_v35 = vpack.c.bf16 %v1993_v33, %v1992_v12 }
  0xf1   :  { %1769 = vmatprep.subr.bf16.mxu0 %v3065_v43  ;;  %1933 = vmatprep.subr.bf16.mxu1 %v3068_v44  ;;  %v2660_v43 = vpack.c.bf16 %v2015_v37, %v2014_v36  ;;  %v1998_v44 = vld [vmem:[%s3441_s3 + $0x120] sm:$0xff]  ;;  %v2025_v36 = vld [vmem:[%s3441_s3 + $0x1f8] sm:$0xff]  ;;  %v1976_v37 = vld [vmem:[%s3441_s3 + $0x70] sm:$0xff] }
  0xf4   :  { %1770 = vmatpush1.bf16.msra.mxu0 %v3063_v45  ;;  %1934 = vmatpush1.bf16.msra.mxu1 %v3066_v46  ;;  %v1999_v45 = vld [vmem:[%s3441_s3 + $0x128] sm:$0xff]  ;;  %v1984_v46 = vld [vmem:[%s3441_s3 + $0xb0] sm:$0xff] }
  0xf5   :  { %1771 = vmatprep.subr.bf16.mxu0 %v3071_v47  ;;  %1935 = vmatprep.subr.bf16.mxu1 %v3074_v48  ;;  %v1985_v47 = vld [vmem:[%s3441_s3 + $0xb8] sm:$0xff]  ;;  %v2016_v48 = vld [vmem:[%s3441_s3 + $0x1b0] sm:$0xff] }
  0xf8   :  { %1772 = vmatpush1.bf16.msra.mxu0 %v3069_v49  ;;  %1936 = vmatpush1.bf16.msra.mxu1 %v3072_v50  ;;  %v2017_v49 = vld [vmem:[%s3441_s3 + $0x1b8] sm:$0xff]  ;;  %v2630_v50 = vpack.c.bf16 %v1967_v41, %v1966_v40  ;;  %v2008_v41 = vld [vmem:[%s3441_s3 + $0x170] sm:$0xff] }
  0xf9   :  { %1773 = vmatprep.subr.bf16.mxu0 %v3077_v51  ;;  %1937 = vmatprep.subr.bf16.mxu1 %v3080_v52  ;;  %v2662_v51 = vpack.c.bf16 %v1999_v45, %v1998_v44  ;;  %v1968_v52 = vld [vmem:[%s3441_s3 + $0x30] sm:$0xff]  ;;  %v302_v44 = vlaneseq }
  0xfb   :  { %v303_v45 = vshrl.u32 %v302_v44, 7 }
  0xfc   :  { %1774 = vmatpush1.bf16.msra.mxu0 %v3075_v53  ;;  %1938 = vmatpush1.bf16.msra.mxu1 %v3078_v54  ;;  %v1969_v53 = vld [vmem:[%s3441_s3 + $0x38] sm:$0xff]  ;;  %v2632_v54 = vpack.c.bf16 %v1985_v47, %v1984_v46 }
  0xfd   :  { %1775 = vmatprep.subr.bf16.mxu0 %v3083_v55  ;;  %1939 = vmatprep.subr.bf16.mxu1 %v3086_v56  ;;  %v2664_v55 = vpack.c.bf16 %v2017_v49, %v2016_v48  ;;  %v2000_v56 = vld [vmem:[%s3441_s3 + $0x130] sm:$0xff]  ;;  %v304_v46 = vsub.s32 0, %v303_v45  ;;  %v312_v47 = vsub.s32 2, %v303_v45  ;;  %v300_v48 = vld [vmem:[%s3440_s2] sm:$0xf]  ;;  %v308_v49 = vsub.s32 1, %v303_v45 }
 0x100   :  { %1776 = vmatpush1.bf16.msra.mxu0 %v3081_v57  ;;  %1940 = vmatpush1.bf16.msra.mxu1 %v3084_v58  ;;  %v2001_v57 = vld [vmem:[%s3441_s3 + $0x138] sm:$0xff]  ;;  %v1986_v58 = vld [vmem:[%s3441_s3 + $0xc0] sm:$0xff] }
 0x101   :  { %1777 = vmatprep.subr.bf16.mxu0 %v3089_v59  ;;  %1941 = vmatprep.subr.bf16.mxu1 %v3092_v60  ;;  %v1987_v59 = vld [vmem:[%s3441_s3 + $0xc8] sm:$0xff]  ;;  %v2018_v60 = vld [vmem:[%s3441_s3 + $0x1c0] sm:$0xff] }
 0x104   :  { %1778 = vmatpush1.bf16.msra.mxu0 %v3087_v61  ;;  %1942 = vmatpush1.bf16.msra.mxu1 %v3090_v62  ;;  %v2019_v61 = vld [vmem:[%s3441_s3 + $0x1c8] sm:$0xff]  ;;  %v2634_v62 = vpack.c.bf16 %v1969_v53, %v1968_v52  ;;  %v313_v52 = vrot.slane %v300_v48, %v312_v47  ;;  %v309_v53 = vrot.slane %v300_v48, %v308_v49 }
 0x105   :  { %1779 = vmatprep.subr.bf16.mxu0 %v3095_v63  ;;  %1943 = vmatprep.subr.bf16.mxu1 %v3098_v0  ;;  %v2666_v63 = vpack.c.bf16 %v2001_v57, %v2000_v56  ;;  %v1970_v0 = vld [vmem:[%s3441_s3 + $0x40] sm:$0xff] }
 0x108   :  { %1780 = vmatpush1.bf16.msra.mxu0 %v3093_v1  ;;  %1944 = vmatpush1.bf16.msra.mxu1 %v3096_v2  ;;  %v1971_v1 = vld [vmem:[%s3441_s3 + $0x48] sm:$0xff]  ;;  %v2636_v2 = vpack.c.bf16 %v1987_v59, %v1986_v58 }
 0x109   :  { %1781 = vmatprep.subr.bf16.mxu0 %v3101_v3  ;;  %1945 = vmatprep.subr.bf16.mxu1 %v3104_v4  ;;  %v2668_v3 = vpack.c.bf16 %v2019_v61, %v2018_v60  ;;  %v2002_v4 = vld [vmem:[%s3441_s3 + $0x140] sm:$0xff]  ;;  %v2638_v10 = vpack.c.bf16 %v1971_v1, %v1970_v0 }
 0x10c   :  { %1782 = vmatpush1.bf16.msra.mxu0 %v3099_v5  ;;  %1946 = vmatpush1.bf16.msra.mxu1 %v3102_v6  ;;  %v2003_v5 = vld [vmem:[%s3441_s3 + $0x148] sm:$0xff]  ;;  %v1988_v6 = vld [vmem:[%s3441_s3 + $0xd0] sm:$0xff] }
 0x10d   :  { %1783 = vmatprep.subr.bf16.mxu0 %v3107_v7  ;;  %1947 = vmatprep.subr.bf16.mxu1 %v3110_v8  ;;  %v1989_v7 = vld [vmem:[%s3441_s3 + $0xd8] sm:$0xff]  ;;  %v2020_v8 = vld [vmem:[%s3441_s3 + $0x1d0] sm:$0xff]  ;;  %v2670_v13 = vpack.c.bf16 %v2003_v5, %v2002_v4 }
 0x10e   :  { %v2672_v17 = vpack.c.bf16 %v2021_v9, %v2020_v8  ;;  %v2175_v8 = vld [vmem:[%s3443_s5 + $0x8] sm:$0xff] }
 0x110   :  { %1784 = vmatpush1.bf16.msra.mxu0 %v3105_v15  ;;  %1948 = vmatpush1.bf16.msra.mxu1 %v3108_v16  ;;  %v1973_v15 = vld [vmem:[%s3441_s3 + $0x58] sm:$0xff]  ;;  %v2640_v16 = vpack.c.bf16 %v1989_v7, %v1988_v6  ;;  %v2174_v7 = vld [vmem:[%s3443_s5] sm:$0xff] }
 0x111   :  { %2621 = vmatprep.subr.bf16.mxu0 %v2620_v18  ;;  %2653 = vmatprep.subr.bf16.mxu1 %v2652_v19  ;;  %v2005_v18 = vld [vmem:[%s3441_s3 + $0x158] sm:$0xff]  ;;  %v1990_v19 = vld [vmem:[%s3441_s3 + $0xe0] sm:$0xff]  ;;  %v2642_v23 = vpack.c.bf16 %v1973_v15, %v1972_v14  ;;  %v2685_v9 = vpack.c.bf16 %v2175_v8, %v2174_v7  ;;  %v2176_v14 = vld [vmem:[%s3443_s5 + $0x10] sm:$0xf] }
 0x112   :  { %v2674_v24 = vpack.c.bf16 %v2005_v18, %v2004_v11  ;;  %v2644_v25 = vpack.c.bf16 %v1991_v20, %v1990_v19 }
 0x113   :  { %1786 = vmatmul.mubr.bf16.vlgmr.msra.gmra.mrb[0].mxu0 %v2275_v26  ;;  %1950 = vmatmul.mubr.bf16.vlgmr.msra.gmra.mrb[0].mxu1 %v2275_v26  ;;  %v2676_v26 = vpack.c.bf16 %v2023_v22, %v2022_v21 }
 0x114   :  { %2623 = vmatpush3.bf16.msra.mxu0 %v2622_v27  ;;  %2655 = vmatpush3.bf16.msra.mxu1 %v2654_v28  ;;  %v1974_v27 = vld [vmem:[%s3441_s3 + $0x60] sm:$0xff]  ;;  %v1975_v28 = vld [vmem:[%s3441_s3 + $0x68] sm:$0xff] }
 0x115   :  { %2625 = vmatprep.subr.bf16.mxu0 %v2624_v31  ;;  %2657 = vmatprep.subr.bf16.mxu1 %v2656_v32  ;;  %v2646_v30 = vpack.c.bf16 %v1975_v28, %v1974_v27  ;;  %v2007_v31 = vld [vmem:[%s3441_s3 + $0x168] sm:$0xff] }
 0x116   :  { %v2678_v32 = vpack.c.bf16 %v2007_v31, %v2006_v29 }
 0x118   :  { %2627 = vmatpush3.bf16.msra.mxu0 %v2626_v38  ;;  %2659 = vmatpush3.bf16.msra.mxu1 %v2658_v39  ;;  %v1977_v38 = vld [vmem:[%s3441_s3 + $0x78] sm:$0xff]  ;;  %v2680_v39 = vpack.c.bf16 %v2025_v36, %v2024_v34 }
 0x119   :  { %2629 = vmatprep.subr.bf16.mxu0 %v2628_v42  ;;  %2661 = vmatprep.subr.bf16.mxu1 %v2660_v43  ;;  %v2650_v40 = vpack.c.bf16 %v1977_v38, %v1976_v37  ;;  %v2009_v42 = vld [vmem:[%s3441_s3 + $0x178] sm:$0xff] }
 0x11a   :  { %v2682_v43 = vpack.c.bf16 %v2009_v42, %v2008_v41 }
 0x11c   :  { %2631 = vmatpush3.bf16.msra.mxu0 %v2630_v50  ;;  %2663 = vmatpush3.bf16.msra.mxu1 %v2662_v51  ;;  %v316_v50 = vsub.s32 3, %v303_v45  ;;  %v305_v51 = vrot.slane %v300_v48, %v304_v46 }
 0x11d   :  { %2633 = vmatprep.subr.bf16.mxu0 %v2632_v54  ;;  %2665 = vmatprep.subr.bf16.mxu1 %v2664_v55 }
 0x11e   :  { %v317_v54 = vrot.slane %v300_v48, %v316_v50 }
 0x120   :  { %2635 = vmatpush3.bf16.msra.mxu0 %v2634_v62  ;;  %2667 = vmatpush3.bf16.msra.mxu1 %v2666_v63 }
 0x121   :  { %2637 = vmatprep.subr.bf16.mxu0 %v2636_v2  ;;  %2669 = vmatprep.subr.bf16.mxu1 %v2668_v3 }
 0x124   :  { %2639 = vmatpush3.bf16.msra.mxu0 %v2638_v10  ;;  %2671 = vmatpush3.bf16.msra.mxu1 %v2670_v13  ;;  %v3140_v10 = vmov 0.0|0.0   ;;  %v3141_v13 = vmov 0.0  }
 0x125   :  { %2641 = vmatprep.subr.bf16.mxu0 %v2640_v16  ;;  %2673 = vmatprep.subr.bf16.mxu1 %v2672_v17  ;;  %v2533_v17 = vld [vmem:[%s3442_s4] ss:$0 sm:$0xff] }
 0x128   :  { %2643 = vmatpush3.bf16.msra.mxu0 %v2642_v23  ;;  %2675 = vmatpush3.bf16.msra.mxu1 %v2674_v24  ;;  %v2534_v24 = vld [vmem:[%s3444_s6] ss:$0 sm:$0xff] }
 0x129   :  { %2645 = vmatprep.subr.bf16.mxu0 %v2644_v25  ;;  %2677 = vmatprep.subr.bf16.mxu1 %v2676_v26 }
 0x12c   :  { %2647 = vmatpush3.bf16.msra.mxu0 %v2646_v30  ;;  %2679 = vmatpush3.bf16.msra.mxu1 %v2678_v32 }
 0x12d   :  { %2649 = vmatprep.subr.bf16.mxu0 %v2648_v35  ;;  %2681 = vmatprep.subr.bf16.mxu1 %v2680_v39 }
 0x130   :  { %2651 = vmatpush3.bf16.msra.mxu0 %v2650_v40  ;;  %2683 = vmatpush3.bf16.msra.mxu1 %v2682_v43 }
 0x131   :  { %2684 = vmatprep.subr.bf16.mxu0 %v3140_v10 }
 0x1e6   :  { %v1787_v55 = vpop.f32.mrb[0].mxu0  ;;  %v1951_v56 = vpop.f32.mrb[0].mxu1 }
 0x1e7   :  { %v2687_v57 = vadd.f32 %v1787_v55, %v305_v51  ;;  %v2689_v58 = vadd.f32 %v1951_v56, %v313_v52  ;;  %v1789_v59 = vpop.f32.mrb[1].mxu0  ;;  %v1953_v60 = vpop.f32.mrb[1].mxu1 }
 0x1e8   :  { %v2688_v61 = vadd.f32 %v1789_v59, %v309_v53  ;;  %v2690_v62 = vadd.f32 %v1953_v60, %v317_v54  ;;  %v1791_v63 = vpop.f32.mrb[2].mxu0  ;;  %v1955_v0 = vpop.f32.mrb[2].mxu1 }
 0x1e9   :  { %v1792_v1 = vpop.f32.mrb[3].mxu0  ;;  %v1956_v2 = vpop.f32.mrb[3].mxu1  ;;  %v1958_v5 = vmax.f32 %v2687_v57, 0.0  ;;  %v1960_v6 = vmax.f32 %v2689_v58, 0.0 }
 0x1ea   :  { %v1959_v3 = vmax.f32 %v2688_v61, 0.0  ;;  %v1961_v4 = vmax.f32 %v2690_v62, 0.0 }
 0x1ec   :  { %2097 = vmatprep.mubr.f32.mxu0 %v1959_v3  ;;  %2167 = vmatprep.mubr.f32.mxu1 %v1961_v4 }
 0x1ed   :  { %2098 = vmatmul.mubr.f32.vlgmr.msra.gmra.mrb[4].mxu0 %v1958_v5  ;;  %2168 = vmatmul.mubr.f32.vlgmr.msra.gmra.mrb[4].mxu1 %v1960_v6 }
 0x1ee   :  { %2686 = vmatpush3.bf16.msra.mxu0 %v2685_v9  ;;  %2617 = vmatprep.mubr.msk.f32.mxu0 %vm3142_vm1, %v3141_v13 }
 0x1ef   :  { %2615 = vmatprep.subr.mxu0 %v3141_v13 }
 0x1f2   :  { %2616 = vmatpush3.msk.msra.mxu0 %vm2188_vm0, %v2176_v14 }
 0x2c0   :  { %v2569_v15 = vpop.f32.mrb[4].mxu0  ;;  %v2604_v16 = vpop.f32.mrb[4].mxu1 }
 0x2c1   :  { %v2570_v11 = vpop.f32.mrb[5].mxu0  ;;  %v2605_v18 = vpop.f32.mrb[5].mxu1 }
 0x2c2   :  { %v2571_v19 = vadd.f32 %v2570_v11, %v2569_v15  ;;  %v2606_v20 = vadd.f32 %v2605_v18, %v2604_v16 }
 0x2c4   :  { %v2100_v21 = vadd.f32 %v2571_v19, %v2533_v17 }
 0x2c6   :  { %v2170_v22 = vadd.f32 %v2606_v20, %v2100_v21 }
 0x2c8   :  { %v2173_v23 = vmax.f32 %v2170_v22, 0.0 }
 0x2ca   :  { %2618 = vmatmul.mubr.msk.f32.vlgmr.msra.gmra.mrb[6].mxu0 %vm2184_vm2, %v2173_v23 }
 0x39d   :  { %v2258_v25 = vpop.f32.mrb[6].mxu0 }
 0x39e   :  { %v2259_v26 = vadd.f32 %v2534_v24, %v2258_v25  ;;  %v2619_v27 = vpop.f32.mrb[7].mxu0 }
 0x3a0   :  { %2263 = vst.msk [vmem:[%s3445_s7] sm:$0xff] %vm2262_vm3, %v2259_v26 }
 0x3a1   :  { %2268 = vsyncpa [#allocation3], 1 }

</bundles_post_ra>
